<compile_context>
chip_gen: v7x
topology: tpu7x:2x2x1
jax: 0.10.0
libtpu: 0.0.40
codegen_flags: <defaults>
</compile_context>

<pallas_src>
import functools

import jax
import jax.numpy as jnp
from jax.experimental import pallas as pl
from jax.experimental.pallas import tpu as pltpu


LANE = 128      # lane width: multiple of 128 -> dense, unmasked loads/stores
MAX_TM = 8192   # max sublane rows per block: (8192,128) f32 tile = 4 MiB
                # -> 2 operands x 2 pipeline buffers = 16 MiB, under the 32 MiB
                #    vmem_limit_bytes we request explicitly (safe on v5e/v6e/v7x).


def _round_up(x, m):
    return ((x + m - 1) // m) * m


def _cdiv(a, b):
    return -(-a // b)


def _mse_partial_kernel(inp_ref, targ_ref, o_ref, *, tm, valid_rows):
    """o[8, LANE] = sublane-group partial sums of (x - where(isnan(t), x, t))**2."""
    # Cast narrow dtypes to f32 on-chip (VPU convert hidden under the DMA).
    x = inp_ref[...].astype(jnp.float32)
    t = targ_ref[...].astype(jnp.float32)
    t = jnp.where(jnp.isnan(t), x, t)          # NaN targets contribute 0 error
    d = x - t
    # Grid over-covers the row axis: rows >= valid_rows hold unspecified data
    # (possibly NaN/Inf), so zero them BEFORE squaring/summing.
    row = pl.program_id(0) * tm + jax.lax.broadcasted_iota(jnp.int32, (tm, LANE), 0)
    d = jnp.where(row < valid_rows, d, 0.0)
    d2 = d * d
    # (tm, LANE) -> (tm//8, 8, LANE) is a pure sublane regrouping (no shuffles);
    # summing axis 0 is just vreg adds.  Cross-block / cross-lane reduction and
    # the division by numel happen outside the kernel on a tiny tensor.
    o_ref[...] = jnp.sum(d2.reshape(tm // 8, 8, LANE), axis=0)


def _min_rows_for_dtype(dt):
    # sublane packing: f32 -> 8, fp16/bf16 -> 16, int8/fp8 -> 32 row multiples
    return 8 * max(1, 4 // jnp.dtype(dt).itemsize)


def my_mse_loss(inp, targ):
    """NaN-masked MSE with mean reduction, matching My_MSELoss.forward."""
    # Module dtype rule: fp16 targets stay fp16, everything else is treated as
    # f32.  We never cast in the wrapper (would be an extra HBM pass); the
    # kernel casts both operands to f32 internally, which is equivalent.
    targ = targ.reshape(inp.shape)             # targ.view(inp.shape)

    numel = inp.size
    min_tm = max(_min_rows_for_dtype(inp.dtype), _min_rows_for_dtype(targ.dtype))

    rows = _cdiv(numel, LANE)
    rows_arr = max(rows, min_tm)               # only differs for tiny inputs
    padded_numel = rows_arr * LANE
    needs_pad = padded_numel != numel          # rare: numel not multiple of 128

    x = inp.reshape(-1)
    t = targ.reshape(-1)
    if needs_pad:
        # Minimal zero pad (< min_tm*LANE elems): isnan(0)=False, diff==0 -> no
        # contribution.  allow_input_fusion lets XLA fuse this pad into the
        # kernel operands instead of materializing an extra HBM pass.
        pad = padded_numel - numel
        x = jnp.pad(x, (0, pad))
        t = jnp.pad(t, (0, pad))
    x = x.reshape(rows_arr, LANE)
    t = t.reshape(rows_arr, LANE)

    # Tile the row axis: biggest block <= MAX_TM, block count >= 2 and even when
    # the input is large enough (both v7x TensorCores get work), tail handled by
    # in-kernel masking rather than padding.
    if rows_arr > min_tm:
        max_tm_fit = (rows_arr // min_tm) * min_tm    # keep first block in-bounds
        n_target = max(2, _cdiv(rows_arr, MAX_TM))
        if n_target % 2:
            n_target += 1
        tm = _round_up(_cdiv(rows_arr, n_target), min_tm)
        tm = min(tm, max_tm_fit, MAX_TM)
    else:
        tm = rows_arr                                  # single full block
    n_blocks = _cdiv(rows_arr, tm)

    kernel = functools.partial(_mse_partial_kernel, tm=tm, valid_rows=rows_arr)

    in_bytes = numel * (jnp.dtype(inp.dtype).itemsize + jnp.dtype(targ.dtype).itemsize)
    out_bytes = n_blocks * 8 * LANE * 4
    cost = pl.CostEstimate(flops=6 * numel, transcendentals=0,
                           bytes_accessed=in_bytes + out_bytes)

    compiler_params = pltpu.CompilerParams(
        dimension_semantics=("parallel",),
        vmem_limit_bytes=32 * 1024 * 1024,
        allow_input_fusion=[True, True] if needs_pad else None,
    )

    partials = pl.pallas_call(
        kernel,
        out_shape=jax.ShapeDtypeStruct((n_blocks * 8, LANE), jnp.float32),
        grid=(n_blocks,),
        in_specs=[
            pl.BlockSpec((tm, LANE), lambda i: (i, 0)),
            pl.BlockSpec((tm, LANE), lambda i: (i, 0)),
        ],
        # Each grid step owns a distinct full (8, 128) output tile -> unmasked
        # stores and a truly parallel (megacore-shardable) grid axis.
        out_specs=pl.BlockSpec((8, LANE), lambda i: (i, 0)),
        compiler_params=compiler_params,
        cost_estimate=cost,
    )(x, t)

    # Tiny final reduction + mean normalization in plain JAX (same jit).
    return jnp.sum(partials) / numel


# --------------------------- pure-JAX reference ----------------------------- #

def _ref_loss(inp, targ):
    if targ.dtype != jnp.float16:
        targ = targ.astype(jnp.float32)
    t = targ.reshape(inp.shape).astype(jnp.float32)
    x = inp.astype(jnp.float32)
    t = jnp.where(jnp.isnan(t), x, t)
    return jnp.mean((x - t) ** 2)


# ---------------------------------- main ------------------------------------ #

if __name__ == "__main__":
    key = jax.random.PRNGKey(0)
    k1, k2, k3, k4, k5, k6 = jax.random.split(key, 6)

    loss_fn = jax.jit(my_mse_loss)
    ref_fn = jax.jit(_ref_loss)

    # --- primary test: small shapes from the spec, with NaNs and a "view" ----
    # numel % 128 == 0 -> no-pad path, 2 blocks, no tail masking needed.
    shape = (2, 4, 16, 16)
    inp = jax.random.normal(k1, shape, dtype=jnp.float32)
    targ = jax.random.normal(k2, shape, dtype=jnp.float32)
    nan_mask = jax.random.bernoulli(k3, 0.1, shape)
    targ = jnp.where(nan_mask, jnp.nan, targ)
    targ = targ.reshape(2, 4, 256)             # different shape, same numel (view)

    out = jax.block_until_ready(loss_fn(inp, targ))
    ref = jax.block_until_ready(ref_fn(inp, targ))
    assert out.shape == (), out.shape
    assert bool(jnp.isfinite(out)), float(out)
    assert jnp.allclose(out, ref, atol=1e-5, rtol=1e-4), (float(out), float(ref))

    # --- float16-target branch (module keeps fp16; kernel casts on-chip) -----
    targ16 = targ.astype(jnp.float16)
    out16 = jax.block_until_ready(loss_fn(inp, targ16))
    ref16 = jax.block_until_ready(ref_fn(inp, targ16))
    assert jnp.allclose(out16, ref16, atol=1e-3, rtol=1e-3), (float(out16), float(ref16))

    # --- larger, non-128-divisible shape: exercises minimal-pad path, grid
    #     over-cover + in-kernel tail-row masking, and the 2-block split. -----
    shape2 = (9, 16, 43, 43)                   # 266256 elems
    inp2 = jax.random.normal(k4, shape2, dtype=jnp.float32)
    targ2 = jax.random.normal(k5, shape2, dtype=jnp.float32)
    nan_mask2 = jax.random.bernoulli(k6, 0.05, shape2)
    targ2 = jnp.where(nan_mask2, jnp.nan, targ2)

    out2 = jax.block_until_ready(loss_fn(inp2, targ2))
    ref2 = jax.block_until_ready(ref_fn(inp2, targ2))
    assert jnp.allclose(out2, ref2, atol=1e-5, rtol=1e-4), (float(out2), float(ref2))

    print("KERNEL_OK")
</pallas_src>

<mosaic_0001>
module attributes {stable_mosaic.version = 11 : i64} {
  func.func @_mse_partial_kernel(%arg0: i32, %arg1: memref<8x128xf32, #tpu.memory_space<vmem>>, %arg2: memref<8x128xf32, #tpu.memory_space<vmem>>, %arg3: memref<8x128xf32, #tpu.memory_space<vmem>>) attributes {dimension_semantics = [#tpu.dimension_semantics<parallel>], iteration_bounds = array<i64: 2>, scalar_prefetch = 0 : i64, scratch_operands = 0 : i64, tpu.core_type = #tpu.core_type<tc>, window_params = [{transform_indices = @transform_0, window_bounds = array<i64: 8, 128>}, {transform_indices = @transform_1, window_bounds = array<i64: 8, 128>}, {transform_indices = @transform_2, window_bounds = array<i64: 8, 128>}]} {
    %c0 = arith.constant 0 : index
    %c0_0 = arith.constant 0 : index
    %0 = vector.load %arg1[%c0, %c0_0] : memref<8x128xf32, #tpu.memory_space<vmem>>, vector<8x128xf32>
    %c0_1 = arith.constant 0 : index
    %c0_2 = arith.constant 0 : index
    %1 = vector.load %arg2[%c0_1, %c0_2] : memref<8x128xf32, #tpu.memory_space<vmem>>, vector<8x128xf32>
    %2 = arith.cmpf one, %1, %1 : vector<8x128xf32>
    %3 = arith.select %2, %0, %1 : vector<8x128xi1>, vector<8x128xf32>
    %4 = arith.subf %0, %3 : vector<8x128xf32>
    %c8_i32 = arith.constant 8 : i32
    %5 = arith.muli %arg0, %c8_i32 : i32
    %6 = tpu.iota {dimensions = array<i32: 0>} : vector<8x128xi32>
    %7 = vector.broadcast %5 : i32 to vector<8x128xi32>
    %8 = arith.addi %7, %6 : vector<8x128xi32>
    %c16_i32 = arith.constant 16 : i32
    %9 = vector.broadcast %c16_i32 : i32 to vector<8x128xi32>
    %10 = arith.cmpi slt, %8, %9 : vector<8x128xi32>
    %cst = arith.constant 0.000000e+00 : f32
    %11 = vector.broadcast %cst : f32 to vector<8x128xf32>
    %12 = arith.select %10, %4, %11 : vector<8x128xi1>, vector<8x128xf32>
    %13 = arith.mulf %12, %12 : vector<8x128xf32>
    %14 = vector.shape_cast %13 : vector<8x128xf32> to vector<1x8x128xf32>
    %cst_3 = arith.constant dense<0.000000e+00> : vector<8x128xf32>
    %15 = vector.multi_reduction <add>, %14, %cst_3 [0] : vector<1x8x128xf32> to vector<8x128xf32>
    %c0_4 = arith.constant 0 : index
    %c0_5 = arith.constant 0 : index
    %16 = vector.load %arg3[%c0_4, %c0_5] : memref<8x128xf32, #tpu.memory_space<vmem>>, vector<8x128xf32>
    tpu.vector_store %arg3[%c0_4, %c0_5], %15 {strides = array<i32>} : memref<8x128xf32, #tpu.memory_space<vmem>>, vector<8x128xf32>,
    return
  }
  func.func @transform_0(%arg0: i32) -> (i32, i32) {
    %c0_i32 = arith.constant 0 : i32
    %c0_i32_0 = arith.constant 0 : i32
    return %arg0, %c0_i32 : i32, i32
  }
  func.func @transform_1(%arg0: i32) -> (i32, i32) {
    %c0_i32 = arith.constant 0 : i32
    %c0_i32_0 = arith.constant 0 : i32
    return %arg0, %c0_i32 : i32, i32
  }
  func.func @transform_2(%arg0: i32) -> (i32, i32) {
    %c0_i32 = arith.constant 0 : i32
    %c0_i32_0 = arith.constant 0 : i32
    return %arg0, %c0_i32 : i32, i32
  }
}

</mosaic_0001>

<bundles_post_ra>
// kernel: my_mse_loss.1
= control target key start
LH: loop header
LB: loop body
LE: loop exit
PB: predicated region body
PF: predicated region fallthrough
CT: control target
= control target key end

     0   :  { %s278_s9 = smov 0   ;;  %s298_s0 = inlined_call_operand.vmem [shape: f32[16,128], index: 0, kind: input, shape index: {}]   ;;  %s299_s1 = inlined_call_operand.vmem [shape: f32[16,128], index: 1, kind: input, shape index: {}]   ;;  %s300_s2 = inlined_call_operand.vmem [shape: f32[16,128], index: 2, kind: output, shape index: {}]  }
   0x1 LB: > { %s236_s10 = sadd.s32 4294967295, %s261_s9   ;;  %p240_p0 = scmp.ge.s32.totalorder %s261_s9, 1  ;;  %s261_s9 = sphi %s278_s9, %s12_s9  }
   0x2   : > { %p120_p1 = scmp.lt.s32.totalorder %s261_s9, 3 }
   0x4   : > { %p121_p2 = pnand %p240_p0, %p120_p1 }
   0x5   : > { %p144_p3 = scmp.lt.s32.totalorder (!%p121_p2), %s236_s10, 1  ;;  %s244_s11 = sshll.u32 (!%p121_p2), %s236_s10, 3  ;;  %v162_v0 = vlaneseq (!%p121_p2) }
   0x6   : > { %124 = sbr.rel (%p121_p2) target bundleno = 26 (0x1a), region = 28  ;;  %v164_v1 = vstv (!%p121_p2), %s244_s11 }
   0x7   : > { %v163_v2 = vshrl.u32 (!%p121_p2), %v162_v0, 7 }
   0x9   : > { %v165_v3 = vadd.s32 (!%p121_p2), %v164_v1, %v163_v2 }
   0xb   : > { %vm166_vm1 = vcmp.lt.s32.totalorder (!%p121_p2), %v165_v3, 16 }
   0xd   : > { %s302_s10 = smov (!%p144_p3, %s236_s10), 1 }
   0xe   : > { %s241_s12 = sshll.u32 %s302_s10, 3 }
   0xf   : > { %s147_s15 = scalar_lea.vmem %s298_s0, %s241_s12  ;;  %s151_s18 = scalar_lea.vmem %s299_s1, %s241_s12 }
  0x10   : > { %v156_v4 = vld [vmem:[%s147_s15] sm:$0xff]  ;;  %s155_s21 = scalar_lea.vmem %s300_s2, %s241_s12 }
  0x11   : > { %v157_v5 = vld [vmem:[%s151_s18] sm:$0xff] }
  0x12   : > { %vm158_vm0 = vcmp.ne.f32.partialorder %v157_v5, %v157_v5 }
  0x13   : > { %v159_v6 = vsel %vm158_vm0, %v156_v4, %v157_v5 }
  0x14   : > { %v160_v7 = vsub.f32 %v156_v4, %v159_v6 }
  0x16   : > { %v167_v8 = vsel %vm166_vm1, %v160_v7, 0.0 }
  0x17   : > { %v168_v9 = vmul.f32 %v167_v8, %v167_v8 }
  0x19   : > { %170 = vst [vmem:[%s155_s21] sm:$0xff] %v168_v9 }
  0x1a PF: > { %s12_s9 = sadd.s32 1, %s261_s9  }
  0x1b   : > { %p9_p4 = scmp.ge.s32.totalorder %s12_s9, 4  }
  0x1d   :  { %11 = sbr.rel (!%p9_p4) target bundleno = 1 (0x1), region = 61 }

</bundles_post_ra>
